<compile_context>
chip_gen: v7x
topology: tpu7x:2x2x1
jax: 0.10.0
libtpu: 0.0.40
codegen_flags: <defaults>
</compile_context>

<pallas_src>
import jax
import jax.numpy as jnp
from jax import lax
from jax.experimental import pallas as pl
from jax.experimental.pallas import tpu as pltpu

# TODO(synk): LexiScorerNet.fit() (training loop / optimizer / early stopping)
# is host-side control logic, not part of the forward pass, and is not
# translated to Pallas.


# ----------------------------------------------------------------------------
# Kernel
# ----------------------------------------------------------------------------
def _make_mlp_kernel(num_layers):
    """Fused MLP kernel.

    Refs: (x_ref, W0, b0, ..., W_{L-1}, b_{L-1}, o_ref)
      layer 0        : sigmoid          (PyTorch `self.input`)
      layers 1..L-2  : relu             (PyTorch `self.hidden_layers`)
      layer L-1      : sigmoid, out=1   (PyTorch `self.out`; identity if L==1)

    Activations are kept in (features, batch) layout so the (large) batch
    rides the lane axis and the (tiny) feature axis rides the sublanes.
    """

    def kernel(*refs):
        x_ref = refs[0]
        param_refs = refs[1:-1]
        o_ref = refs[-1]

        x = x_ref[...].astype(jnp.float32)                        # (bt, F)

        # Layer 0: contract the feature axis of both operands so the result
        # comes out directly as (out0, bt) -- batch on lanes, no explicit
        # transpose pass over the big x tile.
        w0 = param_refs[0][...].astype(jnp.float32)               # (out0, F)
        b0 = param_refs[1][...].astype(jnp.float32)               # (out0, 1)
        z = lax.dot_general(
            w0, x, dimension_numbers=(((1,), (1,)), ((), ())),
            preferred_element_type=jnp.float32) + b0
        h = jax.nn.sigmoid(z)                                     # (out0, bt)

        # Hidden layers: relu(W @ h + b), all in (features, batch) layout.
        for layer in range(1, num_layers - 1):
            w = param_refs[2 * layer][...].astype(jnp.float32)        # (o, i)
            b = param_refs[2 * layer + 1][...].astype(jnp.float32)    # (o, 1)
            z = jnp.dot(w, h, preferred_element_type=jnp.float32) + b
            h = jnp.maximum(z, 0.0)

        if num_layers == 1:
            # hidden_sizes == []: `self.out` is the identity, so the outer
            # sigmoid lands on top of the already-sigmoided h (double sigmoid,
            # matching the PyTorch forward exactly).
            o_ref[...] = jax.nn.sigmoid(h).astype(o_ref.dtype)
        else:
            w_last = param_refs[-2][...].astype(jnp.float32)      # (1, hidden)
            b_last = param_refs[-1][...].astype(jnp.float32)      # (1, 1)
            z = jnp.dot(w_last, h, preferred_element_type=jnp.float32) + b_last
            o_ref[...] = jax.nn.sigmoid(z).astype(o_ref.dtype)    # (1, bt)

    return kernel


# ----------------------------------------------------------------------------
# Hardware-aware sizing helpers
# ----------------------------------------------------------------------------
def _vmem_cap_bytes():
    """~85% of physical per-core VMEM (v5e/v6e: 128 MiB, v7x: 64 MiB)."""
    phys = 64 << 20  # conservative default = v7x per-TensorCore VMEM
    try:
        info = pltpu.get_tpu_info()
        phys = int(getattr(info, "vmem_capacity_bytes", phys))
    except Exception:
        pass
    return int(phys * 0.85)


def _tensorcores_per_device():
    """2 for megacore chips (v4/v5p/v7x), else 1 (v5e/v6e)."""
    try:
        kind = jax.devices()[0].device_kind.lower()
    except Exception:
        return 1
    for tag in ("v7", "v5p", "v4"):
        if tag in kind:
            return 2
    return 1


def _max_tile_rows(feat, widths, itemsize, vmem_budget, hard_cap=8192):
    """Largest multiple-of-128 row count whose per-step footprint fits."""
    max_w = max([feat] + list(widths))
    # double-buffered x block + a few live f32 activation copies + output.
    per_row = 2 * feat * itemsize + 4 * max_w * 4 + 2 * 4
    rows = max(128, vmem_budget // max(per_row, 1))
    rows = (rows // 128) * 128
    return int(min(rows, hard_cap))


def _pick_batch_tile(batch, *, num_cores, max_tile_rows):
    """Generation-aware tile choice.

    1 TensorCore (v5e/v6e): the grid is a serial loop, so use a single
    whole-batch tile whenever it fits (otherwise the largest multiple-of-128
    divisor).  2 TensorCores (v7x): keep >= 2 steps with an *even* step count
    so both cores get balanced work, with tiles as large as possible.
    """
    max_tile_rows = max(128, (max_tile_rows // 128) * 128)
    if num_cores <= 1:
        if batch <= max_tile_rows:
            return batch
        for tile in range(max_tile_rows, 127, -128):
            if batch % tile == 0:
                return tile
        return batch  # no lane-dense divisor; single big tile (VMEM-checked)
    # megacore: even number of big lane-dense steps
    cap = min(max_tile_rows, batch // 2)
    for tile in range((cap // 128) * 128, 127, -128):
        if batch % tile == 0 and (batch // tile) % 2 == 0:
            return tile
    return batch  # can't split cleanly; fall back to one tile


# ----------------------------------------------------------------------------
# pallas_call builder + public wrapper
# ----------------------------------------------------------------------------
def _pallas_forward(x, flat_params, *, num_layers, batch_tile,
                    vmem_limit_bytes, single_buffer_params):
    B, F = x.shape
    num_tiles = B // batch_tile
    kernel = _make_mlp_kernel(num_layers)

    # Constant-index params never need double buffering.
    param_kwargs = ({"pipeline_mode": pl.Buffered(1)}
                    if single_buffer_params else {})

    in_specs = [pl.BlockSpec((batch_tile, F), lambda i: (i, 0))]
    for p in flat_params:
        in_specs.append(pl.BlockSpec(p.shape, lambda i: (0, 0), **param_kwargs))

    # Lane-dense output: (1, B) row tiled as (1, batch_tile) -> unmasked vst.
    out_specs = pl.BlockSpec((1, batch_tile), lambda i: (0, i))

    return pl.pallas_call(
        kernel,
        out_shape=jax.ShapeDtypeStruct((1, B), jnp.float32),
        grid_spec=pltpu.PrefetchScalarGridSpec(
            num_scalar_prefetch=0,
            grid=(num_tiles,),
            in_specs=in_specs,
            out_specs=out_specs,
        ),
        compiler_params=pltpu.CompilerParams(
            dimension_semantics=("parallel",),
            vmem_limit_bytes=vmem_limit_bytes,
        ),
    )(x, *flat_params)


def lexi_scorer_forward(x, params, *, batch_tile=None, stream_dtype="auto",
                        out_layout="col"):
    """LexiScorerNet forward pass as one fused Pallas kernel.

    x       : (B, input_size) float array
    params  : list of (W, b); W is PyTorch-native (out, in), b is (out, 1).
    stream_dtype : None (keep dtype), a dtype, or "auto" (bf16 streaming of
              x/params for large B; in-kernel math stays f32).
    out_layout : "col" -> (B, 1) like PyTorch; "row" -> lane-dense (1, B)
              (skips the relayout pass).
    """
    B, F = x.shape
    num_layers = len(params)

    if isinstance(stream_dtype, str) and stream_dtype == "auto":
        stream_dtype = jnp.bfloat16 if B >= 2048 else None
    if stream_dtype is not None:
        x = x.astype(stream_dtype)
        params = [(w.astype(stream_dtype), b.astype(stream_dtype))
                  for w, b in params]

    flat_params = []
    for w, b in params:
        flat_params += [w, b]

    widths = [w.shape[0] for w, _ in params]           # layer output widths
    param_bytes = sum(int(p.size) * p.dtype.itemsize for p in flat_params)
    itemsize = x.dtype.itemsize

    vmem_cap = _vmem_cap_bytes()
    num_cores = _tensorcores_per_device()

    if batch_tile is None:
        budget = vmem_cap - 2 * param_bytes - (2 << 20)
        max_rows = _max_tile_rows(F, widths, itemsize, budget)
        batch_tile = _pick_batch_tile(B, num_cores=num_cores,
                                      max_tile_rows=max_rows)
    assert B % batch_tile == 0, "batch must be a multiple of the batch tile"
    assert batch_tile == B or batch_tile % 128 == 0, (
        "tiled batches need a lane-dense tile (multiple of 128 rows)")

    # Explicit VMEM budget; raise instead of silently clamping.
    max_w = max([F] + widths)
    x_block = batch_tile * F * itemsize
    out_block = batch_tile * 4
    act_bytes = 4 * batch_tile * max_w * 4            # live f32 intermediates
    needed = 2 * (x_block + out_block) + 2 * param_bytes + act_bytes
    if needed > vmem_cap:
        raise ValueError(
            f"per-step VMEM footprint {needed} B exceeds cap {vmem_cap} B; "
            f"pass a smaller batch_tile (got {batch_tile})")
    vmem_limit_bytes = int(min(max(needed + (2 << 20), 8 << 20), vmem_cap))

    try:
        out_row = _pallas_forward(
            x, flat_params, num_layers=num_layers, batch_tile=batch_tile,
            vmem_limit_bytes=vmem_limit_bytes, single_buffer_params=True)
    except Exception:
        # Fallback for jax versions without Buffered(1) on pallas_call specs;
        # params are KB-scale here so double-buffering them is harmless.
        out_row = _pallas_forward(
            x, flat_params, num_layers=num_layers, batch_tile=batch_tile,
            vmem_limit_bytes=vmem_limit_bytes, single_buffer_params=False)

    if out_layout == "row":
        return out_row                 # lane-dense (1, B); no relayout pass
    return out_row.reshape(B, 1)       # PyTorch-shaped (B, 1)


# ----------------------------------------------------------------------------
# Params + pure-JAX reference (PyTorch semantics)
# ----------------------------------------------------------------------------
def init_params(key, input_size, hidden_sizes):
    """Deterministic params mirroring LexiScorerNet.__init__ shapes.
    All layers PyTorch-native: W (out, in); bias stored as (out, 1)."""
    sizes = [input_size] + list(hidden_sizes) + [1]
    params = []
    for i in range(len(sizes) - 1):
        key, kw, kb = jax.random.split(key, 3)
        fan_in, fan_out = sizes[i], sizes[i + 1]
        w = jax.random.normal(kw, (fan_out, fan_in), jnp.float32) * 0.1
        b = jax.random.normal(kb, (fan_out, 1), jnp.float32) * 0.1
        params.append((w, b))
    return params


def reference_forward(x, params):
    """Pure-JAX reference matching the PyTorch forward semantics."""
    num_layers = len(params)
    w0, b0 = params[0]
    h = jax.nn.sigmoid(x @ w0.T + b0.T)
    for layer in range(1, num_layers - 1):
        w, b = params[layer]
        h = jax.nn.relu(h @ w.T + b.T)
    if num_layers == 1:
        return jax.nn.sigmoid(h)                 # identity `out` -> 2x sigmoid
    w_last, b_last = params[-1]
    return jax.nn.sigmoid(h @ w_last.T + b_last.T)


# ----------------------------------------------------------------------------
# Self-test
# ----------------------------------------------------------------------------
if __name__ == "__main__":
    batch = 256
    input_size = 32
    hidden_sizes = [32, 32]   # Linear(32,32)+sigmoid, Linear(32,32)+relu, Linear(32,1)+sigmoid

    key = jax.random.PRNGKey(0)
    key, kx = jax.random.split(key)
    x = jax.random.normal(kx, (batch, input_size), jnp.float32)
    params = init_params(key, input_size, hidden_sizes)

    out = jax.block_until_ready(lexi_scorer_forward(x, params))
    ref = reference_forward(x, params)
    assert out.shape == (batch, 1)
    max_err = float(jnp.max(jnp.abs(out - ref)))
    assert jnp.allclose(out, ref, atol=1e-5, rtol=1e-5), f"max abs err = {max_err}"

    # hidden_sizes == [] path (identity `out` -> sigmoid applied twice).
    params0 = init_params(jax.random.PRNGKey(1), input_size, [])
    out0 = jax.block_until_ready(lexi_scorer_forward(x, params0))
    ref0 = reference_forward(x, params0)
    assert out0.shape == (batch, 1)
    assert jnp.allclose(out0, ref0, atol=1e-5, rtol=1e-5)

    # bf16 streaming path (memory-roofline option; in-kernel math stays f32,
    # numerics differ only via input/weight rounding -> looser tolerance).
    out_bf16 = jax.block_until_ready(
        lexi_scorer_forward(x, params, stream_dtype=jnp.bfloat16))
    assert jnp.allclose(out_bf16, ref, atol=5e-2)

    # Lane-dense row output (skips the (1,B)->(B,1) relayout in the wrapper).
    out_row = jax.block_until_ready(
        lexi_scorer_forward(x, params, out_layout="row"))
    assert out_row.shape == (1, batch)
    assert jnp.allclose(out_row.reshape(batch, 1), ref, atol=1e-5, rtol=1e-5)

    print("KERNEL_OK")
</pallas_src>

<mosaic_0001>
module attributes {stable_mosaic.version = 11 : i64} {
  func.func @kernel(%arg0: i32, %arg1: memref<256x32xf32, #tpu.memory_space<vmem>>, %arg2: memref<32x32xf32, #tpu.memory_space<vmem>>, %arg3: memref<32x1xf32, #tpu.memory_space<vmem>>, %arg4: memref<32x32xf32, #tpu.memory_space<vmem>>, %arg5: memref<32x1xf32, #tpu.memory_space<vmem>>, %arg6: memref<1x32xf32, #tpu.memory_space<vmem>>, %arg7: memref<1x1xf32, #tpu.memory_space<vmem>>, %arg8: memref<1x256xf32, #tpu.memory_space<vmem>>) attributes {dimension_semantics = [#tpu.dimension_semantics<parallel>], iteration_bounds = array<i64: 1>, scalar_prefetch = 0 : i64, scratch_operands = 0 : i64, tpu.core_type = #tpu.core_type<tc>, window_params = [{transform_indices = @transform_0, window_bounds = array<i64: 256, 32>}, {pipeline_mode = #tpu.pipeline_mode<synchronous>, transform_indices = @transform_1, window_bounds = array<i64: 32, 32>}, {pipeline_mode = #tpu.pipeline_mode<synchronous>, transform_indices = @transform_2, window_bounds = array<i64: 32, 1>}, {pipeline_mode = #tpu.pipeline_mode<synchronous>, transform_indices = @transform_3, window_bounds = array<i64: 32, 32>}, {pipeline_mode = #tpu.pipeline_mode<synchronous>, transform_indices = @transform_4, window_bounds = array<i64: 32, 1>}, {pipeline_mode = #tpu.pipeline_mode<synchronous>, transform_indices = @transform_5, window_bounds = array<i64: 1, 32>}, {pipeline_mode = #tpu.pipeline_mode<synchronous>, transform_indices = @transform_6, window_bounds = array<i64: 1, 1>}, {transform_indices = @transform_7, window_bounds = array<i64: 1, 256>}]} {
    %c0 = arith.constant 0 : index
    %c0_0 = arith.constant 0 : index
    %0 = vector.load %arg1[%c0, %c0_0] : memref<256x32xf32, #tpu.memory_space<vmem>>, vector<256x32xf32>
    %c0_1 = arith.constant 0 : index
    %c0_2 = arith.constant 0 : index
    %1 = vector.load %arg2[%c0_1, %c0_2] : memref<32x32xf32, #tpu.memory_space<vmem>>, vector<32x32xf32>
    %c0_3 = arith.constant 0 : index
    %c0_4 = arith.constant 0 : index
    %2 = vector.load %arg3[%c0_3, %c0_4] : memref<32x1xf32, #tpu.memory_space<vmem>>, vector<32x1xf32>
    %cst = arith.constant dense<0.000000e+00> : vector<32x256xf32>
    %3 = tpu.matmul %1, %0, %cst {dimension_numbers = #tpu.dot_dimension_numbers<[1], [1], [0], [0], [0, 0, 1, 0], [], []>} : vector<32x32xf32>, vector<256x32xf32>, vector<32x256xf32> -> vector<32x256xf32>
    %4 = vector.broadcast %2 : vector<32x1xf32> to vector<32x256xf32>
    %5 = arith.addf %3, %4 : vector<32x256xf32>
    %6 = arith.negf %5 : vector<32x256xf32>
    %7 = math.exp %6 : vector<32x256xf32>
    %cst_5 = arith.constant 1.000000e+00 : f32
    %8 = vector.broadcast %cst_5 : f32 to vector<32x256xf32>
    %9 = arith.addf %8, %7 : vector<32x256xf32>
    %10 = arith.divf %8, %9 : vector<32x256xf32>
    %c0_6 = arith.constant 0 : index
    %c0_7 = arith.constant 0 : index
    %11 = vector.load %arg4[%c0_6, %c0_7] : memref<32x32xf32, #tpu.memory_space<vmem>>, vector<32x32xf32>
    %c0_8 = arith.constant 0 : index
    %c0_9 = arith.constant 0 : index
    %12 = vector.load %arg5[%c0_8, %c0_9] : memref<32x1xf32, #tpu.memory_space<vmem>>, vector<32x1xf32>
    %cst_10 = arith.constant dense<0.000000e+00> : vector<32x256xf32>
    %13 = tpu.matmul %11, %10, %cst_10 {dimension_numbers = #tpu.dot_dimension_numbers<[1], [0], [0], [1], [0, 0, 1, 1], [], []>} : vector<32x32xf32>, vector<32x256xf32>, vector<32x256xf32> -> vector<32x256xf32>
    %14 = vector.broadcast %12 : vector<32x1xf32> to vector<32x256xf32>
    %15 = arith.addf %13, %14 : vector<32x256xf32>
    %cst_11 = arith.constant 0.000000e+00 : f32
    %16 = vector.broadcast %cst_11 : f32 to vector<32x256xf32>
    %17 = arith.maximumf %15, %16 : vector<32x256xf32>
    %c0_12 = arith.constant 0 : index
    %c0_13 = arith.constant 0 : index
    %18 = vector.load %arg6[%c0_12, %c0_13] : memref<1x32xf32, #tpu.memory_space<vmem>>, vector<1x32xf32>
    %c0_14 = arith.constant 0 : index
    %c0_15 = arith.constant 0 : index
    %19 = vector.load %arg7[%c0_14, %c0_15] : memref<1x1xf32, #tpu.memory_space<vmem>>, vector<1x1xf32>
    %cst_16 = arith.constant dense<0.000000e+00> : vector<1x256xf32>
    %20 = tpu.matmul %18, %17, %cst_16 {dimension_numbers = #tpu.dot_dimension_numbers<[1], [0], [0], [1], [0, 0, 1, 1], [], []>} : vector<1x32xf32>, vector<32x256xf32>, vector<1x256xf32> -> vector<1x256xf32>
    %21 = vector.broadcast %19 : vector<1x1xf32> to vector<1x256xf32>
    %22 = arith.addf %20, %21 : vector<1x256xf32>
    %23 = arith.negf %22 : vector<1x256xf32>
    %24 = math.exp %23 : vector<1x256xf32>
    %cst_17 = arith.constant 1.000000e+00 : f32
    %25 = vector.broadcast %cst_17 : f32 to vector<1x256xf32>
    %26 = arith.addf %25, %24 : vector<1x256xf32>
    %27 = arith.divf %25, %26 : vector<1x256xf32>
    %c0_18 = arith.constant 0 : index
    %c0_19 = arith.constant 0 : index
    %28 = vector.load %arg8[%c0_18, %c0_19] : memref<1x256xf32, #tpu.memory_space<vmem>>, vector<1x256xf32>
    tpu.vector_store %arg8[%c0_18, %c0_19], %27 {strides = array<i32>} : memref<1x256xf32, #tpu.memory_space<vmem>>, vector<1x256xf32>,
    return
  }
  func.func @transform_0(%arg0: i32) -> (i32, i32) {
    %c0_i32 = arith.constant 0 : i32
    %c0_i32_0 = arith.constant 0 : i32
    return %arg0, %c0_i32 : i32, i32
  }
  func.func @transform_1(%arg0: i32) -> (i32, i32) {
    %c0_i32 = arith.constant 0 : i32
    %c0_i32_0 = arith.constant 0 : i32
    %c0_i32_1 = arith.constant 0 : i32
    return %c0_i32, %c0_i32_0 : i32, i32
  }
  func.func @transform_2(%arg0: i32) -> (i32, i32) {
    %c0_i32 = arith.constant 0 : i32
    %c0_i32_0 = arith.constant 0 : i32
    %c0_i32_1 = arith.constant 0 : i32
    return %c0_i32, %c0_i32_0 : i32, i32
  }
  func.func @transform_3(%arg0: i32) -> (i32, i32) {
    %c0_i32 = arith.constant 0 : i32
    %c0_i32_0 = arith.constant 0 : i32
    %c0_i32_1 = arith.constant 0 : i32
    return %c0_i32, %c0_i32_0 : i32, i32
  }
  func.func @transform_4(%arg0: i32) -> (i32, i32) {
    %c0_i32 = arith.constant 0 : i32
    %c0_i32_0 = arith.constant 0 : i32
    %c0_i32_1 = arith.constant 0 : i32
    return %c0_i32, %c0_i32_0 : i32, i32
  }
  func.func @transform_5(%arg0: i32) -> (i32, i32) {
    %c0_i32 = arith.constant 0 : i32
    %c0_i32_0 = arith.constant 0 : i32
    %c0_i32_1 = arith.constant 0 : i32
    return %c0_i32, %c0_i32_0 : i32, i32
  }
  func.func @transform_6(%arg0: i32) -> (i32, i32) {
    %c0_i32 = arith.constant 0 : i32
    %c0_i32_0 = arith.constant 0 : i32
    %c0_i32_1 = arith.constant 0 : i32
    return %c0_i32, %c0_i32_0 : i32, i32
  }
  func.func @transform_7(%arg0: i32) -> (i32, i32) {
    %c0_i32 = arith.constant 0 : i32
    %c0_i32_0 = arith.constant 0 : i32
    return %c0_i32, %arg0 : i32, i32
  }
}

module attributes {stable_mosaic.version = 11 : i64} {
  func.func @kernel(%arg0: i32, %arg1: memref<256x32xf32, #tpu.memory_space<vmem>>, %arg2: memref<32x32xf32, #tpu.memory_space<vmem>>, %arg3: memref<32x1xf32, #tpu.memory_space<vmem>>, %arg4: memref<32x32xf32, #tpu.memory_space<vmem>>, %arg5: memref<32x1xf32, #tpu.memory_space<vmem>>, %arg6: memref<1x32xf32, #tpu.memory_space<vmem>>, %arg7: memref<1x1xf32, #tpu.memory_space<vmem>>, %arg8: memref<1x256xf32, #tpu.memory_space<vmem>>) attributes {dimension_semantics = [#tpu.dimension_semantics<parallel>], iteration_bounds = array<i64: 1>, scalar_prefetch = 0 : i64, scratch_operands = 0 : i64, tpu.core_type = #tpu.core_type<tc>, window_params = [{transform_indices = @transform_0, window_bounds = array<i64: 256, 32>}, {pipeline_mode = #tpu.pipeline_mode<synchronous>, transform_indices = @transform_1, window_bounds = array<i64: 32, 32>}, {pipeline_mode = #tpu.pipeline_mode<synchronous>, transform_indices = @transform_2, window_bounds = array<i64: 32, 1>}, {pipeline_mode = #tpu.pipeline_mode<synchronous>, transform_indices = @transform_3, window_bounds = array<i64: 32, 32>}, {pipeline_mode = #tpu.pipeline_mode<synchronous>, transform_indices = @transform_4, window_bounds = array<i64: 32, 1>}, {pipeline_mode = #tpu.pipeline_mode<synchronous>, transform_indices = @transform_5, window_bounds = array<i64: 1, 32>}, {pipeline_mode = #tpu.pipeline_mode<synchronous>, transform_indices = @transform_6, window_bounds = array<i64: 1, 1>}, {transform_indices = @transform_7, window_bounds = array<i64: 1, 256>}]} {
    %c0 = arith.constant 0 : index
    %c0_0 = arith.constant 0 : index
    %0 = vector.load %arg1[%c0, %c0_0] : memref<256x32xf32, #tpu.memory_space<vmem>>, vector<256x32xf32>
    %c0_1 = arith.constant 0 : index
    %c0_2 = arith.constant 0 : index
    %1 = vector.load %arg2[%c0_1, %c0_2] : memref<32x32xf32, #tpu.memory_space<vmem>>, vector<32x32xf32>
    %c0_3 = arith.constant 0 : index
    %c0_4 = arith.constant 0 : index
    %2 = vector.load %arg3[%c0_3, %c0_4] : memref<32x1xf32, #tpu.memory_space<vmem>>, vector<32x1xf32>
    %cst = arith.constant dense<0.000000e+00> : vector<32x256xf32>
    %3 = tpu.matmul %1, %0, %cst {dimension_numbers = #tpu.dot_dimension_numbers<[1], [1], [0], [0], [0, 0, 1, 0], [], []>} : vector<32x32xf32>, vector<256x32xf32>, vector<32x256xf32> -> vector<32x256xf32>
    %4 = vector.broadcast %2 : vector<32x1xf32> to vector<32x256xf32>
    %5 = arith.addf %3, %4 : vector<32x256xf32>
    %6 = arith.negf %5 : vector<32x256xf32>
    %7 = math.exp %6 : vector<32x256xf32>
    %cst_5 = arith.constant 1.000000e+00 : f32
    %8 = vector.broadcast %cst_5 : f32 to vector<32x256xf32>
    %9 = arith.addf %8, %7 : vector<32x256xf32>
    %10 = arith.divf %8, %9 : vector<32x256xf32>
    %c0_6 = arith.constant 0 : index
    %c0_7 = arith.constant 0 : index
    %11 = vector.load %arg4[%c0_6, %c0_7] : memref<32x32xf32, #tpu.memory_space<vmem>>, vector<32x32xf32>
    %c0_8 = arith.constant 0 : index
    %c0_9 = arith.constant 0 : index
    %12 = vector.load %arg5[%c0_8, %c0_9] : memref<32x1xf32, #tpu.memory_space<vmem>>, vector<32x1xf32>
    %cst_10 = arith.constant dense<0.000000e+00> : vector<32x256xf32>
    %13 = tpu.matmul %11, %10, %cst_10 {dimension_numbers = #tpu.dot_dimension_numbers<[1], [0], [0], [1], [0, 0, 1, 1], [], []>} : vector<32x32xf32>, vector<32x256xf32>, vector<32x256xf32> -> vector<32x256xf32>
    %14 = vector.broadcast %12 : vector<32x1xf32> to vector<32x256xf32>
    %15 = arith.addf %13, %14 : vector<32x256xf32>
    %cst_11 = arith.constant 0.000000e+00 : f32
    %16 = vector.broadcast %cst_11 : f32 to vector<32x256xf32>
    %17 = arith.maximumf %15, %16 : vector<32x256xf32>
    %c0_12 = arith.constant 0 : index
    %c0_13 = arith.constant 0 : index
    %18 = vector.load %arg6[%c0_12, %c0_13] : memref<1x32xf32, #tpu.memory_space<vmem>>, vector<1x32xf32>
    %c0_14 = arith.constant 0 : index
    %c0_15 = arith.constant 0 : index
    %19 = vector.load %arg7[%c0_14, %c0_15] : memref<1x1xf32, #tpu.memory_space<vmem>>, vector<1x1xf32>
    %cst_16 = arith.constant dense<0.000000e+00> : vector<1x256xf32>
    %20 = tpu.matmul %18, %17, %cst_16 {dimension_numbers = #tpu.dot_dimension_numbers<[1], [0], [0], [1], [0, 0, 1, 1], [], []>} : vector<1x32xf32>, vector<32x256xf32>, vector<1x256xf32> -> vector<1x256xf32>
    %21 = vector.broadcast %19 : vector<1x1xf32> to vector<1x256xf32>
    %22 = arith.addf %20, %21 : vector<1x256xf32>
    %23 = arith.negf %22 : vector<1x256xf32>
    %24 = math.exp %23 : vector<1x256xf32>
    %cst_17 = arith.constant 1.000000e+00 : f32
    %25 = vector.broadcast %cst_17 : f32 to vector<1x256xf32>
    %26 = arith.addf %25, %24 : vector<1x256xf32>
    %27 = arith.divf %25, %26 : vector<1x256xf32>
    %c0_18 = arith.constant 0 : index
    %c0_19 = arith.constant 0 : index
    %28 = vector.load %arg8[%c0_18, %c0_19] : memref<1x256xf32, #tpu.memory_space<vmem>>, vector<1x256xf32>
    tpu.vector_store %arg8[%c0_18, %c0_19], %27 {strides = array<i32>} : memref<1x256xf32, #tpu.memory_space<vmem>>, vector<1x256xf32>,
    return
  }
  func.func @transform_0(%arg0: i32) -> (i32, i32) {
    %c0_i32 = arith.constant 0 : i32
    %c0_i32_0 = arith.constant 0 : i32
    return %arg0, %c0_i32 : i32, i32
  }
  func.func @transform_1(%arg0: i32) -> (i32, i32) {
    %c0_i32 = arith.constant 0 : i32
    %c0_i32_0 = arith.constant 0 : i32
    %c0_i32_1 = arith.constant 0 : i32
    return %c0_i32, %c0_i32_0 : i32, i32
  }
  func.func @transform_2(%arg0: i32) -> (i32, i32) {
    %c0_i32 = arith.constant 0 : i32
    %c0_i32_0 = arith.constant 0 : i32
    %c0_i32_1 = arith.constant 0 : i32
    return %c0_i32, %c0_i32_0 : i32, i32
  }
  func.func @transform_3(%arg0: i32) -> (i32, i32) {
    %c0_i32 = arith.constant 0 : i32
    %c0_i32_0 = arith.constant 0 : i32
    %c0_i32_1 = arith.constant 0 : i32
    return %c0_i32, %c0_i32_0 : i32, i32
  }
  func.func @transform_4(%arg0: i32) -> (i32, i32) {
    %c0_i32 = arith.constant 0 : i32
    %c0_i32_0 = arith.constant 0 : i32
    %c0_i32_1 = arith.constant 0 : i32
    return %c0_i32, %c0_i32_0 : i32, i32
  }
  func.func @transform_5(%arg0: i32) -> (i32, i32) {
    %c0_i32 = arith.constant 0 : i32
    %c0_i32_0 = arith.constant 0 : i32
    %c0_i32_1 = arith.constant 0 : i32
    return %c0_i32, %c0_i32_0 : i32, i32
  }
  func.func @transform_6(%arg0: i32) -> (i32, i32) {
    %c0_i32 = arith.constant 0 : i32
    %c0_i32_0 = arith.constant 0 : i32
    %c0_i32_1 = arith.constant 0 : i32
    return %c0_i32, %c0_i32_0 : i32, i32
  }
  func.func @transform_7(%arg0: i32) -> (i32, i32) {
    %c0_i32 = arith.constant 0 : i32
    %c0_i32_0 = arith.constant 0 : i32
    return %c0_i32, %arg0 : i32, i32
  }
}

</mosaic_0001>

<bundles_post_ra>
// kernel: tpu_custom_call.1
= control target key start
LH: loop header
LB: loop body
LE: loop exit
PB: predicated region body
PF: predicated region fallthrough
CT: control target
= control target key end

     0   :  { %s1097_s0 = inlined_call_operand.vmem [shape: f32[256,32], index: 0, kind: input, shape index: {}]   ;;  %s1098_s1 = inlined_call_operand.vmem [shape: f32[32,32], index: 1, kind: input, shape index: {}]   ;;  %s1099_s2 = inlined_call_operand.vmem [shape: f32[32,1], index: 2, kind: input, shape index: {}]   ;;  %s1100_s3 = inlined_call_operand.vmem [shape: f32[32,32], index: 3, kind: input, shape index: {}]   ;;  %s1101_s4 = inlined_call_operand.vmem [shape: f32[32,1], index: 4, kind: input, shape index: {}]   ;;  %s1102_s5 = inlined_call_operand.vmem [shape: f32[1,32], index: 5, kind: input, shape index: {}]   ;;  %s1103_s6 = inlined_call_operand.<no memory space> [shape: f32[1,1], index: 6, kind: input, shape index: {}]   ;;  %s1104_s7 = inlined_call_operand.hbm [shape: f32[1,256], index: 7, kind: output, shape index: {}]  }
   0x1   :  { %v12_v0 = vstv %s1103_s6 }
   0x2   :  { %13 = vst [vmem:[#allocation2] sm:$0x1] %v12_v0 }
   0x3   :  { %v45_v1 = vld [vmem:[%s1097_s0 + $0x80] sm:$0xff]  ;;  %v46_v2 = vld [vmem:[%s1097_s0 + $0x88] sm:$0xff]  ;;  %vm89_vm0 = vcmask 261120   ;;  %v47_v7 = vld [vmem:[%s1097_s0 + $0x90] sm:$0xff]  ;;  %v831_v8 = vmov 0  }
   0x4   :  { %v29_v3 = vld [vmem:[%s1097_s0] sm:$0xff]  ;;  %v697_v4 = vpack.c.bf16 %v46_v2, %v45_v1  ;;  %vm889_vm1 = vmpackc.low %vm89_vm0, %vm89_vm0  ;;  %v30_v6 = vld [vmem:[%s1097_s0 + $0x8] sm:$0xff]  ;;  %765 = vset.pattern.permute.xlu0 %v831_v8  ;;  %766 = vset.pattern.permute.xlu1 %v831_v8 }
   0x5   :  { %v700_v9 = vpack.c.bf16 %v30_v6, %v29_v3  ;;  %v48_v10 = vld [vmem:[%s1097_s0 + $0x98] sm:$0xff]  ;;  %v31_v12 = vld [vmem:[%s1097_s0 + $0x10] sm:$0xff]  ;;  %v49_v14 = vld [vmem:[%s1097_s0 + $0xa0] sm:$0xff] }
   0x6   :  { %699 = vmatprep.subr.msk.bf16.mxu0 %vm889_vm1, %v697_v4  ;;  %v703_v11 = vpack.c.bf16 %v48_v10, %v47_v7  ;;  %v32_v13 = vld [vmem:[%s1097_s0 + $0x18] sm:$0xff]  ;;  %v50_v15 = vld [vmem:[%s1097_s0 + $0xa8] sm:$0xff]  ;;  %v923_v18 = vld [vmem:[%s1098_s1] sm:$0xff] }
   0x7   :  { %702 = vmatpush3.bf16.xpose.msk.msra.mxu0 %vm889_vm1, %v700_v9  ;;  %v706_v16 = vpack.c.bf16 %v32_v13, %v31_v12  ;;  %v709_v17 = vpack.c.bf16 %v50_v15, %v49_v14  ;;  %689 = vmatprep.mubr.msk.f32.mxu0 %vm89_vm0, %v923_v18  ;;  %v65_v19 = vld [vmem:[%s1099_s2] sm:$0xff]  ;;  %v34_v21 = vld [vmem:[%s1097_s0 + $0x28] sm:$0xff]  ;;  %v67_v22 = vld [vmem:[%s1099_s2 + $0x10] sm:$0xff] }
   0x8   :  { %705 = vmatprep.subr.msk.bf16.mxu0 %vm889_vm1, %v703_v11  ;;  %v33_v20 = vld [vmem:[%s1097_s0 + $0x20] sm:$0xff]  ;;  %71 = vperm.xlu0 %765, %v65_v19   ;;  %v51_v23 = vld [vmem:[%s1097_s0 + $0xb0] sm:$0xff]  ;;  %v52_v24 = vld [vmem:[%s1097_s0 + $0xb8] sm:$0xff] }
   0x9   :  { %v66_v25 = vld [vmem:[%s1099_s2 + $0x8] sm:$0xff]  ;;  %81 = vperm.xlu1 %766, %v67_v22   ;;  %v68_v26 = vld [vmem:[%s1099_s2 + $0x18] sm:$0xff] }
   0xf   :  { %708 = vmatpush3.bf16.xpose.msk.msra.mxu0 %vm889_vm1, %v706_v16 }
  0x10   :  { %711 = vmatprep.subr.msk.bf16.mxu0 %vm889_vm1, %v709_v17 }
  0x11   :  { %14 = vsyncpa [#allocation4], 0  ;;  %v712_v27 = vpack.c.bf16 %v34_v21, %v33_v20  ;;  %v715_v28 = vpack.c.bf16 %v52_v24, %v51_v23  ;;  %76 = vperm.xlu0 %765, %v66_v25   ;;  %v339_v29 = vld [vmem:[%s1101_s4] sm:$0xff]  ;;  %86 = vperm.xlu1 %766, %v68_v26   ;;  %v340_v30 = vld [vmem:[%s1101_s4 + $0x8] sm:$0xff]  ;;  %v832_v0 = vmov 0.0  }
  0x12   :  { %v35_v31 = vld [vmem:[%s1097_s0 + $0x30] sm:$0xff]  ;;  %v36_v32 = vld [vmem:[%s1097_s0 + $0x38] sm:$0xff]  ;;  %v53_v33 = vld [vmem:[%s1097_s0 + $0xc0] sm:$0xff]  ;;  %439 = vmatprep.mubr.f32.mxu1 %v832_v0 }
  0x13   :  { %v54_v34 = vld [vmem:[%s1097_s0 + $0xc8] sm:$0xff]  ;;  %v341_v35 = vld [vmem:[%s1101_s4 + $0x10] sm:$0xff]  ;;  %v342_v36 = vld [vmem:[%s1101_s4 + $0x18] sm:$0xff]  ;;  %v718_v37 = vpack.c.bf16 %v36_v32, %v35_v31 }
  0x14   :  { %v721_v38 = vpack.c.bf16 %v54_v34, %v53_v33  ;;  %v473_v39 = vld [vmem:[#allocation2] sm:$0x1]  ;;  %v38_v41 = vld [vmem:[%s1097_s0 + $0x48] sm:$0xff]  ;;  %v55_v42 = vld [vmem:[%s1097_s0 + $0xd0] sm:$0xff] }
  0x15   :  { %345 = vperm.xlu0 %765, %v339_v29   ;;  %350 = vperm.xlu1 %766, %v340_v30   ;;  %v37_v40 = vld [vmem:[%s1097_s0 + $0x40] sm:$0xff]  ;;  %v56_v43 = vld [vmem:[%s1097_s0 + $0xd8] sm:$0xff]  ;;  %v39_v46 = vld [vmem:[%s1097_s0 + $0x50] sm:$0xff] }
  0x16   :  { %v724_v44 = vpack.c.bf16 %v38_v41, %v37_v40  ;;  %v727_v45 = vpack.c.bf16 %v56_v43, %v55_v42  ;;  %v40_v47 = vld [vmem:[%s1097_s0 + $0x58] sm:$0xff]  ;;  %v57_v48 = vld [vmem:[%s1097_s0 + $0xe0] sm:$0xff]  ;;  %v58_v49 = vld [vmem:[%s1097_s0 + $0xe8] sm:$0xff] }
  0x17   :  { %714 = vmatpush3.bf16.xpose.msk.msra.mxu0 %vm889_vm1, %v712_v27  ;;  %v730_v50 = vpack.c.bf16 %v40_v47, %v39_v46  ;;  %v733_v51 = vpack.c.bf16 %v58_v49, %v57_v48  ;;  %v41_v52 = vld [vmem:[%s1097_s0 + $0x60] sm:$0xff]  ;;  %v42_v53 = vld [vmem:[%s1097_s0 + $0x68] sm:$0xff]  ;;  %v59_v54 = vld [vmem:[%s1097_s0 + $0xf0] sm:$0xff] }
  0x18   :  { %717 = vmatprep.subr.msk.bf16.mxu0 %vm889_vm1, %v715_v28  ;;  %v60_v55 = vld [vmem:[%s1097_s0 + $0xf8] sm:$0xff]  ;;  %v736_v56 = vpack.c.bf16 %v42_v53, %v41_v52  ;;  %v43_v58 = vld [vmem:[%s1097_s0 + $0x70] sm:$0xff]  ;;  %v62_v61 = vld [vmem:[%s1098_s1 + $0x8] sm:$0xff] }
  0x19   :  { %355 = vperm.xlu0 %765, %v341_v35   ;;  %360 = vperm.xlu1 %766, %v342_v36   ;;  %v739_v57 = vpack.c.bf16 %v60_v55, %v59_v54  ;;  %v44_v59 = vld [vmem:[%s1097_s0 + $0x78] sm:$0xff]  ;;  %v63_v62 = vld [vmem:[%s1098_s1 + $0x10] sm:$0xff] }
  0x1a   :  { %v742_v60 = vpack.c.bf16 %v44_v59, %v43_v58  ;;  %v64_v63 = vld [vmem:[%s1098_s1 + $0x18] sm:$0xff]  ;;  %v336_v58 = vld [vmem:[%s1100_s3 + $0x8] sm:$0xff]  ;;  %v337_v59 = vld [vmem:[%s1100_s3 + $0x10] sm:$0xff] }
  0x1d   :  { %476 = vperm.xlu0 %765, %v473_v39  }
  0x1f   :  { %720 = vmatpush3.bf16.xpose.msk.msra.mxu0 %vm889_vm1, %v718_v37 }
  0x20   :  { %723 = vmatprep.subr.msk.bf16.mxu0 %vm889_vm1, %v721_v38 }
  0x27   :  { %726 = vmatpush3.bf16.xpose.msk.msra.mxu0 %vm889_vm1, %v724_v44 }
  0x28   :  { %729 = vmatprep.subr.msk.bf16.mxu0 %vm889_vm1, %v727_v45 }
  0x2f   :  { %732 = vmatpush3.bf16.xpose.msk.msra.mxu0 %vm889_vm1, %v730_v50 }
  0x30   :  { %735 = vmatprep.subr.msk.bf16.mxu0 %vm889_vm1, %v733_v51 }
  0x37   :  { %738 = vmatpush3.bf16.xpose.msk.msra.mxu0 %vm889_vm1, %v736_v56 }
  0x38   :  { %741 = vmatprep.subr.msk.bf16.mxu0 %vm889_vm1, %v739_v57  ;;  %v335_v57 = vld [vmem:[%s1100_s3] sm:$0xff] }
  0x3f   :  { %744 = vmatpush3.bf16.xpose.msk.msra.mxu0 %vm889_vm1, %v742_v60  ;;  %v338_v60 = vld [vmem:[%s1100_s3 + $0x18] sm:$0xff] }
  0x46   :  { %690 = vmatmul.mubr.msk.f32.vlgmr.msra.gmra.mrb[0].mxu0 %vm89_vm0, %v923_v18 }
  0x47   :  { %691 = vmatprep.mubr.msk.f32.mxu0 %vm89_vm0, %v62_v61 }
  0x4a   :  { %692 = vmatmul.mubr.msk.f32.gmra.mrb[2].mxu0 %vm89_vm0, %v62_v61 }
  0x4b   :  { %693 = vmatprep.mubr.msk.f32.mxu0 %vm89_vm0, %v63_v62 }
  0x4e   :  { %694 = vmatmul.mubr.msk.f32.gmra.mrb[4].mxu0 %vm89_vm0, %v63_v62 }
  0x4f   :  { %695 = vmatprep.mubr.msk.f32.mxu0 %vm89_vm0, %v64_v63 }
  0x52   :  { %696 = vmatmul.mubr.msk.f32.gmra.mrb[6].mxu0 %vm89_vm0, %v64_v63 }
  0x87   :  { %v72_v1 = vpop.permute.xlu0 %71 }
  0x88   :  { %v82_v12 = vpop.permute.xlu1 %81 }
  0x90   :  { %v77_v7 = vpop.permute.xlu0 %76  ;;  %v87_v21 = vpop.permute.xlu1 %86 }
  0x94   :  { %v346_v63 = vpop.permute.xlu0 %345 }
 0x119   :  { %v264_v2 = vpop.f32.mrb[0].mxu0 }
 0x11a   :  { %v265_v3 = vadd.f32 %v264_v2, %v72_v1  ;;  %v266_v4 = vpop.f32.mrb[1].mxu0  ;;  %v351_v2 = vpop.permute.xlu1 %350 }
 0x11b   :  { %v267_v5 = vadd.f32 %v266_v4, %v72_v1 }
 0x11c   :  { %v642_v6 = vmul.f32 -1.442695, %v265_v3 }
 0x11d   :  { %v643_v8 = vmul.f32 -1.442695, %v267_v5  ;;  %v270_v9 = vpop.f32.mrb[2].mxu0 }
 0x11e   :  { %767 = vpow2.f32 %v642_v6  ;;  %v271_v10 = vadd.f32 %v270_v9, %v77_v7  ;;  %v272_v11 = vpop.f32.mrb[3].mxu0 }
 0x11f   :  { %769 = vpow2.f32 %v643_v8  ;;  %v273_v13 = vadd.f32 %v272_v11, %v77_v7 }
 0x120   :  { %v644_v14 = vmul.f32 -1.442695, %v271_v10 }
 0x121   :  { %v645_v15 = vmul.f32 -1.442695, %v273_v13  ;;  %v276_v16 = vpop.f32.mrb[4].mxu0 }
 0x122   :  { %771 = vpow2.f32 %v644_v14  ;;  %v277_v17 = vadd.f32 %v276_v16, %v82_v12  ;;  %v278_v18 = vpop.f32.mrb[5].mxu0 }
 0x123   :  { %773 = vpow2.f32 %v645_v15  ;;  %v279_v19 = vadd.f32 %v278_v18, %v82_v12  ;;  %v356_v15 = vpop.permute.xlu0 %355 }
 0x124   :  { %v646_v20 = vmul.f32 -1.442695, %v277_v17  ;;  %v361_v17 = vpop.permute.xlu1 %360 }
 0x125   :  { %v647_v22 = vmul.f32 -1.442695, %v279_v19  ;;  %v282_v23 = vpop.f32.mrb[6].mxu0 }
 0x126   :  { %775 = vpow2.f32 %v646_v20  ;;  %v283_v24 = vadd.f32 %v282_v23, %v87_v21  ;;  %v284_v25 = vpop.f32.mrb[7].mxu0 }
 0x127   :  { %v285_v26 = vadd.f32 %v284_v25, %v87_v21  ;;  %777 = vpow2.f32 %v647_v22 }
 0x128   :  { %v768_v27 = vpop.eup %767  ;;  %v648_v28 = vmul.f32 -1.442695, %v283_v24 }
 0x129   :  { %v770_v29 = vpop.eup %769  ;;  %v311_v30 = vadd.f32 1.0, %v768_v27  ;;  %v649_v31 = vmul.f32 -1.442695, %v285_v26 }
 0x12a   :  { %v312_v32 = vadd.f32 1.0, %v770_v29  ;;  %779 = vpow2.f32 %v648_v28  ;;  %v472_v29 = vld [vmem:[%s1102_s5] sm:$0x1]  ;;  %s834_s5 = smov [#allocation3]  }
 0x12b   :  { %781 = vrcp.f32 %v311_v30  ;;  %v479_v30 = vlaneseq  ;;  %s598_s20 = sshll.u32 %s834_s5, 4  ;;  %s599_s20 = int_to_ptr.vmem [resolvable:$true] %s598_s20 }
 0x12c   :  { %v772_v33 = vpop.eup %771  ;;  %783 = vpow2.f32 %v649_v31  ;;  %s807_s21 = scalar_lea.vmem %s599_s20, 32  ;;  %p812_p1 = scmp.lt.s32.totalorder %s599_s20, %s599_s20 }
 0x12d   :  { %v774_v34 = vpop.eup %773  ;;  %v313_v35 = vadd.f32 1.0, %v772_v33  ;;  %785 = vrcp.f32 %v312_v32  ;;  %v480_v31 = vshrl.u32 %v479_v30, 7  ;;  %v477_v33 = vpop.permute.xlu0 %476  ;;  %vm589_vm2 = vcmp.lt.s32.totalorder %v479_v30, 256  ;;  %p808_p0 = scmp.ne.s32.totalorder %s599_s20, %s807_s21  ;;  %p813_p2 = scmp.lt.s32.totalorder %s807_s21, %s807_s21 }
 0x12e   :  { %v314_v36 = vadd.f32 1.0, %v774_v34 }
 0x12f   :  { %787 = vrcp.f32 %v313_v35  ;;  %v481_v32 = vsub.s32 0, %v480_v31  ;;  %p814_p3 = por %p813_p2, %p812_p1 }
 0x130   :  { %v776_v37 = vpop.eup %775  ;;  %789 = vrcp.f32 %v314_v36 }
 0x131   :  { %v778_v38 = vpop.eup %777  ;;  %v315_v39 = vadd.f32 1.0, %v776_v37  ;;  %v482_v34 = vrot.slane %v477_v33, %v481_v32  ;;  %p815_p4 = pnand %p814_p3, %p808_p0 }
 0x132   :  { %v316_v41 = vadd.f32 1.0, %v778_v38 }
 0x133   :  { %791 = vrcp.f32 %v315_v39 }
 0x134   :  { %v780_v40 = vpop.eup %779 }
 0x135   :  { %v317_v42 = vadd.f32 1.0, %v780_v40  ;;  %v782_v43 = vpop.eup %781 }
 0x136   :  { %v784_v44 = vpop.eup %783 }
 0x137   :  { %793 = vrcp.f32 %v317_v42  ;;  %v786_v45 = vpop.eup %785  ;;  %v318_v46 = vadd.f32 1.0, %v784_v44 }
 0x138   :  { %795 = vrcp.f32 %v316_v41 }
 0x139   :  { %v788_v47 = vpop.eup %787  ;;  %797 = vrcp.f32 %v318_v46 }
 0x13a   :  { %v790_v48 = vpop.eup %789  ;;  %v747_v49 = vpack.c.bf16 %v788_v47, %v782_v43 }
 0x13b   :  { %v745_v50 = vpack.c.bf16 %v790_v48, %v786_v45  ;;  %v833_v45 = vmov 1966171168  }
 0x13c   :  { %v573_v46 = vunpack.c.l.s4 %v833_v45 }
 0x13d   :  { %746 = vmatprep.subr.bf16.mxu1 %v745_v50  ;;  %v792_v51 = vpop.eup %791 }
 0x13e   :  { %748 = vmatpush1.bf16.msra.mxu1 %v747_v49  ;;  %v574_v47 = vunpack.c.0.s8 %v573_v46 }
 0x140   :  { %v577_v49 = vsub.s32 %v574_v47, %v480_v31 }
 0x141   :  { %v794_v52 = vpop.eup %793 }
 0x142   :  { %v751_v53 = vpack.c.bf16 %v794_v52, %v792_v51  ;;  %v796_v54 = vpop.eup %795 }
 0x143   :  { %v798_v55 = vpop.eup %797 }
 0x144   :  { %v749_v56 = vpack.c.bf16 %v798_v55, %v796_v54 }
 0x146   :  { %750 = vmatprep.subr.bf16.mxu1 %v749_v56 }
 0x147   :  { %752 = vmatpush1.bf16.msra.mxu1 %v751_v53 }
 0x14a   :  { %650 = vmatmul.mubr.msk.f32.vlgmr.msra.gmra.mrb[0].mxu1 %vm89_vm0, %v335_v57 }
 0x14b   :  { %445 = vmatprep.mubr.f32.mxu1 %v832_v0 }
 0x14e   :  { %651 = vmatmul.mubr.msk.f32.gmra.mrb[2].mxu1 %vm89_vm0, %v336_v58 }
 0x14f   :  { %451 = vmatprep.mubr.f32.mxu1 %v832_v0 }
 0x152   :  { %652 = vmatmul.mubr.msk.f32.gmra.mrb[4].mxu1 %vm89_vm0, %v337_v59 }
 0x153   :  { %457 = vmatprep.mubr.f32.mxu1 %v832_v0 }
 0x156   :  { %653 = vmatmul.mubr.msk.f32.gmra.mrb[6].mxu1 %vm89_vm0, %v338_v60 }
 0x157   :  { %550 = vmatprep.mubr.f32.mxu1 %v832_v0 }
 0x21d   :  { %v441_v61 = vpop.f32.mrb[0].mxu1 }
 0x21e   :  { %v443_v62 = vpop.f32.mrb[1].mxu1  ;;  %v442_v1 = vadd.f32 %v441_v61, %v346_v63 }
 0x21f   :  { %v444_v3 = vadd.f32 %v443_v62, %v346_v63 }
 0x220   :  { %v464_v8 = vmax.f32 %v442_v1, 0.0 }
 0x221   :  { %v447_v4 = vpop.f32.mrb[2].mxu1  ;;  %v465_v10 = vmax.f32 %v444_v3, 0.0 }
 0x222   :  { %v448_v5 = vadd.f32 %v447_v4, %v351_v2  ;;  %v449_v6 = vpop.f32.mrb[3].mxu1 }
 0x223   :  { %v450_v7 = vadd.f32 %v449_v6, %v351_v2 }
 0x224   :  { %v466_v9 = vmax.f32 %v448_v5, 0.0 }
 0x225   :  { %v467_v11 = vmax.f32 %v450_v7, 0.0  ;;  %v453_v12 = vpop.f32.mrb[4].mxu1 }
 0x226   :  { %v755_v13 = vpack.c.bf16 %v466_v9, %v464_v8  ;;  %v455_v14 = vpop.f32.mrb[5].mxu1  ;;  %v454_v0 = vadd.f32 %v453_v12, %v356_v15 }
 0x227   :  { %v753_v16 = vpack.c.bf16 %v467_v11, %v465_v10  ;;  %v456_v18 = vadd.f32 %v455_v14, %v356_v15 }
 0x228   :  { %v468_v23 = vmax.f32 %v454_v0, 0.0 }
 0x229   :  { %v459_v19 = vpop.f32.mrb[6].mxu1  ;;  %754 = vmatprep.subr.bf16.mxu1 %v753_v16  ;;  %v469_v25 = vmax.f32 %v456_v18, 0.0 }
 0x22a   :  { %v460_v20 = vadd.f32 %v459_v19, %v361_v17  ;;  %v461_v21 = vpop.f32.mrb[7].mxu1  ;;  %756 = vmatpush1.bf16.msra.mxu1 %v755_v13 }
 0x22b   :  { %v462_v22 = vadd.f32 %v461_v21, %v361_v17 }
 0x22c   :  { %v470_v24 = vmax.f32 %v460_v20, 0.0 }
 0x22d   :  { %v471_v26 = vmax.f32 %v462_v22, 0.0 }
 0x22e   :  { %v759_v27 = vpack.c.bf16 %v470_v24, %v468_v23 }
 0x22f   :  { %v757_v28 = vpack.c.bf16 %v471_v26, %v469_v25 }
 0x231   :  { %758 = vmatprep.subr.bf16.mxu1 %v757_v28 }
 0x232   :  { %760 = vmatpush1.bf16.msra.mxu1 %v759_v27 }
 0x235   :  { %654 = vmatmul.mubr.msk.f32.vlgmr.msra.gmra.mrb[8].mxu1 %vm89_vm0, %v472_v29 }
 0x308   :  { %v552_v35 = vpop.f32.mrb[8].mxu1 }
 0x309   :  { %v553_v36 = vadd.f32 %v552_v35, %v482_v34  ;;  %v554_v37 = vpop.f32.mrb[9].mxu1 }
 0x30a   :  { %v555_v38 = vadd.f32 %v554_v37, %v482_v34 }
 0x30b   :  { %v655_v39 = vmul.f32 -1.442695, %v553_v36 }
 0x30c   :  { %v656_v40 = vmul.f32 -1.442695, %v555_v38 }
 0x30d   :  { %799 = vpow2.f32 %v655_v39 }
 0x30e   :  { %801 = vpow2.f32 %v656_v40 }
 0x317   :  { %v800_v41 = vpop.eup %799 }
 0x318   :  { %v802_v42 = vpop.eup %801  ;;  %v563_v43 = vadd.f32 1.0, %v800_v41 }
 0x319   :  { %v564_v44 = vadd.f32 1.0, %v802_v42 }
 0x31a   :  { %803 = vrcp.f32 %v563_v43 }
 0x31b   :  { %805 = vrcp.f32 %v564_v44 }
 0x324   :  { %v804_v48 = vpop.eup %803 }
 0x325   :  { %v806_v50 = vpop.eup %805 }
 0x326   :  { %v571_v51 = vcombine.low %v804_v48, %v806_v50 }
 0x328   :  { %v578_v52 = vrot.slane %v571_v51, %v577_v49 }
 0x32a   :  { %v585_v53 = vrot.slane %v578_v52, %v577_v49 }
 0x32c   :  { %591 = vst.msk [vmem:[#allocation3] sm:$0x3] %vm589_vm2, %v585_v53 }
 0x32d   :  { %818 = shalt.err (!%p815_p4)
}
 0x32e   :  { %s819_s24 = scalar_lea.hbm %s1104_s7, 32 }
 0x32f   :  { %p820_p5 = scmp.ne.s32.totalorder %s1104_s7, %s819_s24  ;;  %p823_p6 = scmp.lt.u32.totalorder %s819_s24, %s1104_s7 }
 0x331   :  { %p825_p7 = pnand %p823_p6, %p820_p5 }
 0x333   :  { %828 = shalt.err (!%p825_p7)
}
 0x334   :  { %601 = dma.vmem_to_hbm [thread:$0]  %s599_s20, 32, %s1104_s7, [#allocation4]  }
 0x335   :  { %829 = dma.done.wait [#allocation4], 32  }
 0x336   :  { %830 = vsyncadd [#allocation4], 4294967264 }
 0x337   :  { %605 = vsyncpa [#allocation4], 1 }

// kernel: tpu_custom_call.1
= control target key start
LH: loop header
LB: loop body
LE: loop exit
PB: predicated region body
PF: predicated region fallthrough
CT: control target
= control target key end

     0   :  { %s1097_s0 = inlined_call_operand.vmem [shape: f32[256,32], index: 0, kind: input, shape index: {}]   ;;  %s1098_s1 = inlined_call_operand.vmem [shape: f32[32,32], index: 1, kind: input, shape index: {}]   ;;  %s1099_s2 = inlined_call_operand.vmem [shape: f32[32,1], index: 2, kind: input, shape index: {}]   ;;  %s1100_s3 = inlined_call_operand.vmem [shape: f32[32,32], index: 3, kind: input, shape index: {}]   ;;  %s1101_s4 = inlined_call_operand.vmem [shape: f32[32,1], index: 4, kind: input, shape index: {}]   ;;  %s1102_s5 = inlined_call_operand.vmem [shape: f32[1,32], index: 5, kind: input, shape index: {}]   ;;  %s1103_s6 = inlined_call_operand.<no memory space> [shape: f32[1,1], index: 6, kind: input, shape index: {}]   ;;  %s1104_s7 = inlined_call_operand.hbm [shape: f32[1,256], index: 7, kind: output, shape index: {}]  }
   0x1   :  { %v12_v0 = vstv %s1103_s6 }
   0x2   :  { %13 = vst [vmem:[#allocation2] sm:$0x1] %v12_v0 }
   0x3   :  { %v45_v1 = vld [vmem:[%s1097_s0 + $0x80] sm:$0xff]  ;;  %v46_v2 = vld [vmem:[%s1097_s0 + $0x88] sm:$0xff]  ;;  %vm89_vm0 = vcmask 261120   ;;  %v47_v7 = vld [vmem:[%s1097_s0 + $0x90] sm:$0xff]  ;;  %v831_v8 = vmov 0  }
   0x4   :  { %v29_v3 = vld [vmem:[%s1097_s0] sm:$0xff]  ;;  %v697_v4 = vpack.c.bf16 %v46_v2, %v45_v1  ;;  %vm889_vm1 = vmpackc.low %vm89_vm0, %vm89_vm0  ;;  %v30_v6 = vld [vmem:[%s1097_s0 + $0x8] sm:$0xff]  ;;  %765 = vset.pattern.permute.xlu0 %v831_v8  ;;  %766 = vset.pattern.permute.xlu1 %v831_v8 }
   0x5   :  { %v700_v9 = vpack.c.bf16 %v30_v6, %v29_v3  ;;  %v48_v10 = vld [vmem:[%s1097_s0 + $0x98] sm:$0xff]  ;;  %v31_v12 = vld [vmem:[%s1097_s0 + $0x10] sm:$0xff]  ;;  %v49_v14 = vld [vmem:[%s1097_s0 + $0xa0] sm:$0xff] }
   0x6   :  { %699 = vmatprep.subr.msk.bf16.mxu0 %vm889_vm1, %v697_v4  ;;  %v703_v11 = vpack.c.bf16 %v48_v10, %v47_v7  ;;  %v32_v13 = vld [vmem:[%s1097_s0 + $0x18] sm:$0xff]  ;;  %v50_v15 = vld [vmem:[%s1097_s0 + $0xa8] sm:$0xff]  ;;  %v923_v18 = vld [vmem:[%s1098_s1] sm:$0xff] }
   0x7   :  { %702 = vmatpush3.bf16.xpose.msk.msra.mxu0 %vm889_vm1, %v700_v9  ;;  %v706_v16 = vpack.c.bf16 %v32_v13, %v31_v12  ;;  %v709_v17 = vpack.c.bf16 %v50_v15, %v49_v14  ;;  %689 = vmatprep.mubr.msk.f32.mxu0 %vm89_vm0, %v923_v18  ;;  %v65_v19 = vld [vmem:[%s1099_s2] sm:$0xff]  ;;  %v34_v21 = vld [vmem:[%s1097_s0 + $0x28] sm:$0xff]  ;;  %v67_v22 = vld [vmem:[%s1099_s2 + $0x10] sm:$0xff] }
   0x8   :  { %705 = vmatprep.subr.msk.bf16.mxu0 %vm889_vm1, %v703_v11  ;;  %v33_v20 = vld [vmem:[%s1097_s0 + $0x20] sm:$0xff]  ;;  %71 = vperm.xlu0 %765, %v65_v19   ;;  %v51_v23 = vld [vmem:[%s1097_s0 + $0xb0] sm:$0xff]  ;;  %v52_v24 = vld [vmem:[%s1097_s0 + $0xb8] sm:$0xff] }
   0x9   :  { %v66_v25 = vld [vmem:[%s1099_s2 + $0x8] sm:$0xff]  ;;  %81 = vperm.xlu1 %766, %v67_v22   ;;  %v68_v26 = vld [vmem:[%s1099_s2 + $0x18] sm:$0xff] }
   0xf   :  { %708 = vmatpush3.bf16.xpose.msk.msra.mxu0 %vm889_vm1, %v706_v16 }
  0x10   :  { %711 = vmatprep.subr.msk.bf16.mxu0 %vm889_vm1, %v709_v17 }
  0x11   :  { %14 = vsyncpa [#allocation4], 0  ;;  %v712_v27 = vpack.c.bf16 %v34_v21, %v33_v20  ;;  %v715_v28 = vpack.c.bf16 %v52_v24, %v51_v23  ;;  %76 = vperm.xlu0 %765, %v66_v25   ;;  %v339_v29 = vld [vmem:[%s1101_s4] sm:$0xff]  ;;  %86 = vperm.xlu1 %766, %v68_v26   ;;  %v340_v30 = vld [vmem:[%s1101_s4 + $0x8] sm:$0xff]  ;;  %v832_v0 = vmov 0.0  }
  0x12   :  { %v35_v31 = vld [vmem:[%s1097_s0 + $0x30] sm:$0xff]  ;;  %v36_v32 = vld [vmem:[%s1097_s0 + $0x38] sm:$0xff]  ;;  %v53_v33 = vld [vmem:[%s1097_s0 + $0xc0] sm:$0xff]  ;;  %439 = vmatprep.mubr.f32.mxu1 %v832_v0 }
  0x13   :  { %v54_v34 = vld [vmem:[%s1097_s0 + $0xc8] sm:$0xff]  ;;  %v341_v35 = vld [vmem:[%s1101_s4 + $0x10] sm:$0xff]  ;;  %v342_v36 = vld [vmem:[%s1101_s4 + $0x18] sm:$0xff]  ;;  %v718_v37 = vpack.c.bf16 %v36_v32, %v35_v31 }
  0x14   :  { %v721_v38 = vpack.c.bf16 %v54_v34, %v53_v33  ;;  %v473_v39 = vld [vmem:[#allocation2] sm:$0x1]  ;;  %v38_v41 = vld [vmem:[%s1097_s0 + $0x48] sm:$0xff]  ;;  %v55_v42 = vld [vmem:[%s1097_s0 + $0xd0] sm:$0xff] }
  0x15   :  { %345 = vperm.xlu0 %765, %v339_v29   ;;  %350 = vperm.xlu1 %766, %v340_v30   ;;  %v37_v40 = vld [vmem:[%s1097_s0 + $0x40] sm:$0xff]  ;;  %v56_v43 = vld [vmem:[%s1097_s0 + $0xd8] sm:$0xff]  ;;  %v39_v46 = vld [vmem:[%s1097_s0 + $0x50] sm:$0xff] }
  0x16   :  { %v724_v44 = vpack.c.bf16 %v38_v41, %v37_v40  ;;  %v727_v45 = vpack.c.bf16 %v56_v43, %v55_v42  ;;  %v40_v47 = vld [vmem:[%s1097_s0 + $0x58] sm:$0xff]  ;;  %v57_v48 = vld [vmem:[%s1097_s0 + $0xe0] sm:$0xff]  ;;  %v58_v49 = vld [vmem:[%s1097_s0 + $0xe8] sm:$0xff] }
  0x17   :  { %714 = vmatpush3.bf16.xpose.msk.msra.mxu0 %vm889_vm1, %v712_v27  ;;  %v730_v50 = vpack.c.bf16 %v40_v47, %v39_v46  ;;  %v733_v51 = vpack.c.bf16 %v58_v49, %v57_v48  ;;  %v41_v52 = vld [vmem:[%s1097_s0 + $0x60] sm:$0xff]  ;;  %v42_v53 = vld [vmem:[%s1097_s0 + $0x68] sm:$0xff]  ;;  %v59_v54 = vld [vmem:[%s1097_s0 + $0xf0] sm:$0xff] }
  0x18   :  { %717 = vmatprep.subr.msk.bf16.mxu0 %vm889_vm1, %v715_v28  ;;  %v60_v55 = vld [vmem:[%s1097_s0 + $0xf8] sm:$0xff]  ;;  %v736_v56 = vpack.c.bf16 %v42_v53, %v41_v52  ;;  %v43_v58 = vld [vmem:[%s1097_s0 + $0x70] sm:$0xff]  ;;  %v62_v61 = vld [vmem:[%s1098_s1 + $0x8] sm:$0xff] }
  0x19   :  { %355 = vperm.xlu0 %765, %v341_v35   ;;  %360 = vperm.xlu1 %766, %v342_v36   ;;  %v739_v57 = vpack.c.bf16 %v60_v55, %v59_v54  ;;  %v44_v59 = vld [vmem:[%s1097_s0 + $0x78] sm:$0xff]  ;;  %v63_v62 = vld [vmem:[%s1098_s1 + $0x10] sm:$0xff] }
  0x1a   :  { %v742_v60 = vpack.c.bf16 %v44_v59, %v43_v58  ;;  %v64_v63 = vld [vmem:[%s1098_s1 + $0x18] sm:$0xff]  ;;  %v336_v58 = vld [vmem:[%s1100_s3 + $0x8] sm:$0xff]  ;;  %v337_v59 = vld [vmem:[%s1100_s3 + $0x10] sm:$0xff] }
  0x1d   :  { %476 = vperm.xlu0 %765, %v473_v39  }
  0x1f   :  { %720 = vmatpush3.bf16.xpose.msk.msra.mxu0 %vm889_vm1, %v718_v37 }
  0x20   :  { %723 = vmatprep.subr.msk.bf16.mxu0 %vm889_vm1, %v721_v38 }
  0x27   :  { %726 = vmatpush3.bf16.xpose.msk.msra.mxu0 %vm889_vm1, %v724_v44 }
  0x28   :  { %729 = vmatprep.subr.msk.bf16.mxu0 %vm889_vm1, %v727_v45 }
  0x2f   :  { %732 = vmatpush3.bf16.xpose.msk.msra.mxu0 %vm889_vm1, %v730_v50 }
  0x30   :  { %735 = vmatprep.subr.msk.bf16.mxu0 %vm889_vm1, %v733_v51 }
  0x37   :  { %738 = vmatpush3.bf16.xpose.msk.msra.mxu0 %vm889_vm1, %v736_v56 }
  0x38   :  { %741 = vmatprep.subr.msk.bf16.mxu0 %vm889_vm1, %v739_v57  ;;  %v335_v57 = vld [vmem:[%s1100_s3] sm:$0xff] }
  0x3f   :  { %744 = vmatpush3.bf16.xpose.msk.msra.mxu0 %vm889_vm1, %v742_v60  ;;  %v338_v60 = vld [vmem:[%s1100_s3 + $0x18] sm:$0xff] }
  0x46   :  { %690 = vmatmul.mubr.msk.f32.vlgmr.msra.gmra.mrb[0].mxu0 %vm89_vm0, %v923_v18 }
  0x47   :  { %691 = vmatprep.mubr.msk.f32.mxu0 %vm89_vm0, %v62_v61 }
  0x4a   :  { %692 = vmatmul.mubr.msk.f32.gmra.mrb[2].mxu0 %vm89_vm0, %v62_v61 }
  0x4b   :  { %693 = vmatprep.mubr.msk.f32.mxu0 %vm89_vm0, %v63_v62 }
  0x4e   :  { %694 = vmatmul.mubr.msk.f32.gmra.mrb[4].mxu0 %vm89_vm0, %v63_v62 }
  0x4f   :  { %695 = vmatprep.mubr.msk.f32.mxu0 %vm89_vm0, %v64_v63 }
  0x52   :  { %696 = vmatmul.mubr.msk.f32.gmra.mrb[6].mxu0 %vm89_vm0, %v64_v63 }
  0x87   :  { %v72_v1 = vpop.permute.xlu0 %71 }
  0x88   :  { %v82_v12 = vpop.permute.xlu1 %81 }
  0x90   :  { %v77_v7 = vpop.permute.xlu0 %76  ;;  %v87_v21 = vpop.permute.xlu1 %86 }
  0x94   :  { %v346_v63 = vpop.permute.xlu0 %345 }
 0x119   :  { %v264_v2 = vpop.f32.mrb[0].mxu0 }
 0x11a   :  { %v265_v3 = vadd.f32 %v264_v2, %v72_v1  ;;  %v266_v4 = vpop.f32.mrb[1].mxu0  ;;  %v351_v2 = vpop.permute.xlu1 %350 }
 0x11b   :  { %v267_v5 = vadd.f32 %v266_v4, %v72_v1 }
 0x11c   :  { %v642_v6 = vmul.f32 -1.442695, %v265_v3 }
 0x11d   :  { %v643_v8 = vmul.f32 -1.442695, %v267_v5  ;;  %v270_v9 = vpop.f32.mrb[2].mxu0 }
 0x11e   :  { %767 = vpow2.f32 %v642_v6  ;;  %v271_v10 = vadd.f32 %v270_v9, %v77_v7  ;;  %v272_v11 = vpop.f32.mrb[3].mxu0 }
 0x11f   :  { %769 = vpow2.f32 %v643_v8  ;;  %v273_v13 = vadd.f32 %v272_v11, %v77_v7 }
 0x120   :  { %v644_v14 = vmul.f32 -1.442695, %v271_v10 }
 0x121   :  { %v645_v15 = vmul.f32 -1.442695, %v273_v13  ;;  %v276_v16 = vpop.f32.mrb[4].mxu0 }
 0x122   :  { %771 = vpow2.f32 %v644_v14  ;;  %v277_v17 = vadd.f32 %v276_v16, %v82_v12  ;;  %v278_v18 = vpop.f32.mrb[5].mxu0 }
 0x123   :  { %773 = vpow2.f32 %v645_v15  ;;  %v279_v19 = vadd.f32 %v278_v18, %v82_v12  ;;  %v356_v15 = vpop.permute.xlu0 %355 }
 0x124   :  { %v646_v20 = vmul.f32 -1.442695, %v277_v17  ;;  %v361_v17 = vpop.permute.xlu1 %360 }
 0x125   :  { %v647_v22 = vmul.f32 -1.442695, %v279_v19  ;;  %v282_v23 = vpop.f32.mrb[6].mxu0 }
 0x126   :  { %775 = vpow2.f32 %v646_v20  ;;  %v283_v24 = vadd.f32 %v282_v23, %v87_v21  ;;  %v284_v25 = vpop.f32.mrb[7].mxu0 }
 0x127   :  { %v285_v26 = vadd.f32 %v284_v25, %v87_v21  ;;  %777 = vpow2.f32 %v647_v22 }
 0x128   :  { %v768_v27 = vpop.eup %767  ;;  %v648_v28 = vmul.f32 -1.442695, %v283_v24 }
 0x129   :  { %v770_v29 = vpop.eup %769  ;;  %v311_v30 = vadd.f32 1.0, %v768_v27  ;;  %v649_v31 = vmul.f32 -1.442695, %v285_v26 }
 0x12a   :  { %v312_v32 = vadd.f32 1.0, %v770_v29  ;;  %779 = vpow2.f32 %v648_v28  ;;  %v472_v29 = vld [vmem:[%s1102_s5] sm:$0x1]  ;;  %s834_s5 = smov [#allocation3]  }
 0x12b   :  { %781 = vrcp.f32 %v311_v30  ;;  %v479_v30 = vlaneseq  ;;  %s598_s20 = sshll.u32 %s834_s5, 4  ;;  %s599_s20 = int_to_ptr.vmem [resolvable:$true] %s598_s20 }
 0x12c   :  { %v772_v33 = vpop.eup %771  ;;  %783 = vpow2.f32 %v649_v31  ;;  %s807_s21 = scalar_lea.vmem %s599_s20, 32  ;;  %p812_p1 = scmp.lt.s32.totalorder %s599_s20, %s599_s20 }
 0x12d   :  { %v774_v34 = vpop.eup %773  ;;  %v313_v35 = vadd.f32 1.0, %v772_v33  ;;  %785 = vrcp.f32 %v312_v32  ;;  %v480_v31 = vshrl.u32 %v479_v30, 7  ;;  %v477_v33 = vpop.permute.xlu0 %476  ;;  %vm589_vm2 = vcmp.lt.s32.totalorder %v479_v30, 256  ;;  %p808_p0 = scmp.ne.s32.totalorder %s599_s20, %s807_s21  ;;  %p813_p2 = scmp.lt.s32.totalorder %s807_s21, %s807_s21 }
 0x12e   :  { %v314_v36 = vadd.f32 1.0, %v774_v34 }
 0x12f   :  { %787 = vrcp.f32 %v313_v35  ;;  %v481_v32 = vsub.s32 0, %v480_v31  ;;  %p814_p3 = por %p813_p2, %p812_p1 }
 0x130   :  { %v776_v37 = vpop.eup %775  ;;  %789 = vrcp.f32 %v314_v36 }
 0x131   :  { %v778_v38 = vpop.eup %777  ;;  %v315_v39 = vadd.f32 1.0, %v776_v37  ;;  %v482_v34 = vrot.slane %v477_v33, %v481_v32  ;;  %p815_p4 = pnand %p814_p3, %p808_p0 }
 0x132   :  { %v316_v41 = vadd.f32 1.0, %v778_v38 }
 0x133   :  { %791 = vrcp.f32 %v315_v39 }
 0x134   :  { %v780_v40 = vpop.eup %779 }
 0x135   :  { %v317_v42 = vadd.f32 1.0, %v780_v40  ;;  %v782_v43 = vpop.eup %781 }
 0x136   :  { %v784_v44 = vpop.eup %783 }
 0x137   :  { %793 = vrcp.f32 %v317_v42  ;;  %v786_v45 = vpop.eup %785  ;;  %v318_v46 = vadd.f32 1.0, %v784_v44 }
 0x138   :  { %795 = vrcp.f32 %v316_v41 }
 0x139   :  { %v788_v47 = vpop.eup %787  ;;  %797 = vrcp.f32 %v318_v46 }
 0x13a   :  { %v790_v48 = vpop.eup %789  ;;  %v747_v49 = vpack.c.bf16 %v788_v47, %v782_v43 }
 0x13b   :  { %v745_v50 = vpack.c.bf16 %v790_v48, %v786_v45  ;;  %v833_v45 = vmov 1966171168  }
 0x13c   :  { %v573_v46 = vunpack.c.l.s4 %v833_v45 }
 0x13d   :  { %746 = vmatprep.subr.bf16.mxu1 %v745_v50  ;;  %v792_v51 = vpop.eup %791 }
 0x13e   :  { %748 = vmatpush1.bf16.msra.mxu1 %v747_v49  ;;  %v574_v47 = vunpack.c.0.s8 %v573_v46 }
 0x140   :  { %v577_v49 = vsub.s32 %v574_v47, %v480_v31 }
 0x141   :  { %v794_v52 = vpop.eup %793 }
 0x142   :  { %v751_v53 = vpack.c.bf16 %v794_v52, %v792_v51  ;;  %v796_v54 = vpop.eup %795 }
 0x143   :  { %v798_v55 = vpop.eup %797 }
 0x144   :  { %v749_v56 = vpack.c.bf16 %v798_v55, %v796_v54 }
 0x146   :  { %750 = vmatprep.subr.bf16.mxu1 %v749_v56 }
 0x147   :  { %752 = vmatpush1.bf16.msra.mxu1 %v751_v53 }
 0x14a   :  { %650 = vmatmul.mubr.msk.f32.vlgmr.msra.gmra.mrb[0].mxu1 %vm89_vm0, %v335_v57 }
 0x14b   :  { %445 = vmatprep.mubr.f32.mxu1 %v832_v0 }
 0x14e   :  { %651 = vmatmul.mubr.msk.f32.gmra.mrb[2].mxu1 %vm89_vm0, %v336_v58 }
 0x14f   :  { %451 = vmatprep.mubr.f32.mxu1 %v832_v0 }
 0x152   :  { %652 = vmatmul.mubr.msk.f32.gmra.mrb[4].mxu1 %vm89_vm0, %v337_v59 }
 0x153   :  { %457 = vmatprep.mubr.f32.mxu1 %v832_v0 }
 0x156   :  { %653 = vmatmul.mubr.msk.f32.gmra.mrb[6].mxu1 %vm89_vm0, %v338_v60 }
 0x157   :  { %550 = vmatprep.mubr.f32.mxu1 %v832_v0 }
 0x21d   :  { %v441_v61 = vpop.f32.mrb[0].mxu1 }
 0x21e   :  { %v443_v62 = vpop.f32.mrb[1].mxu1  ;;  %v442_v1 = vadd.f32 %v441_v61, %v346_v63 }
 0x21f   :  { %v444_v3 = vadd.f32 %v443_v62, %v346_v63 }
 0x220   :  { %v464_v8 = vmax.f32 %v442_v1, 0.0 }
 0x221   :  { %v447_v4 = vpop.f32.mrb[2].mxu1  ;;  %v465_v10 = vmax.f32 %v444_v3, 0.0 }
 0x222   :  { %v448_v5 = vadd.f32 %v447_v4, %v351_v2  ;;  %v449_v6 = vpop.f32.mrb[3].mxu1 }
 0x223   :  { %v450_v7 = vadd.f32 %v449_v6, %v351_v2 }
 0x224   :  { %v466_v9 = vmax.f32 %v448_v5, 0.0 }
 0x225   :  { %v467_v11 = vmax.f32 %v450_v7, 0.0  ;;  %v453_v12 = vpop.f32.mrb[4].mxu1 }
 0x226   :  { %v755_v13 = vpack.c.bf16 %v466_v9, %v464_v8  ;;  %v455_v14 = vpop.f32.mrb[5].mxu1  ;;  %v454_v0 = vadd.f32 %v453_v12, %v356_v15 }
 0x227   :  { %v753_v16 = vpack.c.bf16 %v467_v11, %v465_v10  ;;  %v456_v18 = vadd.f32 %v455_v14, %v356_v15 }
 0x228   :  { %v468_v23 = vmax.f32 %v454_v0, 0.0 }
 0x229   :  { %v459_v19 = vpop.f32.mrb[6].mxu1  ;;  %754 = vmatprep.subr.bf16.mxu1 %v753_v16  ;;  %v469_v25 = vmax.f32 %v456_v18, 0.0 }
 0x22a   :  { %v460_v20 = vadd.f32 %v459_v19, %v361_v17  ;;  %v461_v21 = vpop.f32.mrb[7].mxu1  ;;  %756 = vmatpush1.bf16.msra.mxu1 %v755_v13 }
 0x22b   :  { %v462_v22 = vadd.f32 %v461_v21, %v361_v17 }
 0x22c   :  { %v470_v24 = vmax.f32 %v460_v20, 0.0 }
 0x22d   :  { %v471_v26 = vmax.f32 %v462_v22, 0.0 }
 0x22e   :  { %v759_v27 = vpack.c.bf16 %v470_v24, %v468_v23 }
 0x22f   :  { %v757_v28 = vpack.c.bf16 %v471_v26, %v469_v25 }
 0x231   :  { %758 = vmatprep.subr.bf16.mxu1 %v757_v28 }
 0x232   :  { %760 = vmatpush1.bf16.msra.mxu1 %v759_v27 }
 0x235   :  { %654 = vmatmul.mubr.msk.f32.vlgmr.msra.gmra.mrb[8].mxu1 %vm89_vm0, %v472_v29 }
 0x308   :  { %v552_v35 = vpop.f32.mrb[8].mxu1 }
 0x309   :  { %v553_v36 = vadd.f32 %v552_v35, %v482_v34  ;;  %v554_v37 = vpop.f32.mrb[9].mxu1 }
 0x30a   :  { %v555_v38 = vadd.f32 %v554_v37, %v482_v34 }
 0x30b   :  { %v655_v39 = vmul.f32 -1.442695, %v553_v36 }
 0x30c   :  { %v656_v40 = vmul.f32 -1.442695, %v555_v38 }
 0x30d   :  { %799 = vpow2.f32 %v655_v39 }
 0x30e   :  { %801 = vpow2.f32 %v656_v40 }
 0x317   :  { %v800_v41 = vpop.eup %799 }
 0x318   :  { %v802_v42 = vpop.eup %801  ;;  %v563_v43 = vadd.f32 1.0, %v800_v41 }
 0x319   :  { %v564_v44 = vadd.f32 1.0, %v802_v42 }
 0x31a   :  { %803 = vrcp.f32 %v563_v43 }
 0x31b   :  { %805 = vrcp.f32 %v564_v44 }
 0x324   :  { %v804_v48 = vpop.eup %803 }
 0x325   :  { %v806_v50 = vpop.eup %805 }
 0x326   :  { %v571_v51 = vcombine.low %v804_v48, %v806_v50 }
 0x328   :  { %v578_v52 = vrot.slane %v571_v51, %v577_v49 }
 0x32a   :  { %v585_v53 = vrot.slane %v578_v52, %v577_v49 }
 0x32c   :  { %591 = vst.msk [vmem:[#allocation3] sm:$0x3] %vm589_vm2, %v585_v53 }
 0x32d   :  { %818 = shalt.err (!%p815_p4)
}
 0x32e   :  { %s819_s24 = scalar_lea.hbm %s1104_s7, 32 }
 0x32f   :  { %p820_p5 = scmp.ne.s32.totalorder %s1104_s7, %s819_s24  ;;  %p823_p6 = scmp.lt.u32.totalorder %s819_s24, %s1104_s7 }
 0x331   :  { %p825_p7 = pnand %p823_p6, %p820_p5 }
 0x333   :  { %828 = shalt.err (!%p825_p7)
}
 0x334   :  { %601 = dma.vmem_to_hbm [thread:$0]  %s599_s20, 32, %s1104_s7, [#allocation4]  }
 0x335   :  { %829 = dma.done.wait [#allocation4], 32  }
 0x336   :  { %830 = vsyncadd [#allocation4], 4294967264 }
 0x337   :  { %605 = vsyncpa [#allocation4], 1 }

</bundles_post_ra>
